<compile_context>
chip_gen: v5e
topology: v5e:2x2
jax: 0.10.0
libtpu: 0.0.40
codegen_flags: <defaults>
</compile_context>

<pallas_src>
import functools

import jax
import jax.numpy as jnp
import numpy as np
from jax.experimental import pallas as pl
from jax.experimental.pallas import tpu as pltpu


def coordatt_kernel(H, W, x_ref, w1_ref, s1_ref, wh_ref, bh_ref, ww_ref,
                    bw_ref, row_ref, col_ref, o_ref):
    HW = H * W
    f32 = jnp.float32

    # 0/1 expansion masks, regenerated each step from tiny index vectors
    # (VPU iota+compare; single-buffered temporaries, never touch HBM).
    h_iota = jax.lax.broadcasted_iota(jnp.int32, (H, HW), 0)
    w_iota = jax.lax.broadcasted_iota(jnp.int32, (W, HW), 0)
    eh = (row_ref[...] == h_iota).astype(f32)            # (H, HW)
    ew = (col_ref[...] == w_iota).astype(f32)            # (W, HW)

    xb = x_ref[...]                                      # (R, HW), R = nb*C

    # --- adaptive avg pools: contract the lane (HW) axis on the MXU.
    dn = (((1,), (1,)), ((), ()))                        # A @ B.T form
    xh = jax.lax.dot_general(xb, eh, dn, preferred_element_type=f32) * (1.0 / W)  # (R, H)
    xw = jax.lax.dot_general(xb, ew, dn, preferred_element_type=f32) * (1.0 / H)  # (R, W)

    # --- conv1 (1x1) with bias + eval BN folded, batched over samples via a
    #     block-diagonal weight; ReLU.  (conv1 is per-column linear, so the
    #     concat/split of the reference is replaced by two branches exactly.)
    yh = jnp.maximum(
        jnp.dot(w1_ref[...], xh, preferred_element_type=f32) + s1_ref[...], 0.0)  # (nb*mip, H)
    yw = jnp.maximum(
        jnp.dot(w1_ref[...], xw, preferred_element_type=f32) + s1_ref[...], 0.0)  # (nb*mip, W)

    # --- conv_h / conv_w (1x1) + sigmoid -> attention gates (block-diag batched)
    ah = jax.nn.sigmoid(
        jnp.dot(wh_ref[...], yh, preferred_element_type=f32) + bh_ref[...])       # (R, H)
    aw = jax.nn.sigmoid(
        jnp.dot(ww_ref[...], yw, preferred_element_type=f32) + bw_ref[...])       # (R, W)

    # --- expand gates to (R, HW) and apply; staged so only one block-sized
    #     gate temporary is live at a time.
    ah_f = jnp.dot(ah, eh, preferred_element_type=f32)                            # (R, HW)
    o_ref[...] = (xb * ah_f).astype(o_ref.dtype)
    aw_f = jnp.dot(aw, ew, preferred_element_type=f32)                            # (R, HW)
    o_ref[...] = (o_ref[...] * aw_f).astype(o_ref.dtype)


def _footprint_bytes(nb, C, H, W, mip, itemsize):
    """Rough per-step VMEM footprint: pipelined I/O buffers, in-kernel
    temporaries, regenerated masks, double-buffered small weights."""
    HW = H * W
    blk = nb * C * HW * itemsize
    io_bufs = 4 * blk                                   # x + out, double-buffered
    temps = 2 * blk                                     # one gate + x/out value
    masks = 2 * (H + W) * HW * 4                        # eh/ew (+ int headroom)
    wts = 4 * (3 * (nb * mip) * (nb * C) + nb * mip + 2 * nb * C)
    idx = 2 * HW * 4
    return io_bufs + temps + masks + 2 * (wts + idx)


def _pick_nb(N, C, H, W, mip, itemsize,
             target_block_bytes=4 << 20, row_cap=512, budget_bytes=44 << 20):
    """Pick samples-per-step nb: nb*C rows must be a multiple of 8 (or the full
    N*C), block ~target bytes, block-diag weights bounded, footprint in budget;
    prefer an even grid length >= 2 so both v7x TensorCores stay busy."""
    HW = H * W
    valid = [d for d in range(1, N + 1)
             if N % d == 0 and ((d * C) % 8 == 0 or d == N)]
    ok = [d for d in valid
          if d * C * HW * itemsize <= target_block_bytes
          and d * max(C, mip) <= row_cap
          and _footprint_bytes(d, C, H, W, mip, itemsize) <= budget_bytes]
    if not ok:
        # TODO(synk): channel/HW tiling for samples that exceed the VMEM budget.
        return min(valid, key=lambda d: _footprint_bytes(d, C, H, W, mip, itemsize))
    even = [d for d in ok if (N // d) % 2 == 0 and N // d >= 2]
    pool = even if even else ok
    return max(pool)


def coord_att(x, params):
    """x: (N, C, H, W) float32. params: dict from init_params."""
    N, C, H, W = x.shape
    HW = H * W
    mip = params["w1_folded"].shape[0]
    assert params["w_h"].shape[0] == C, "out_channels must equal in_channels"
    dtype = x.dtype
    itemsize = jnp.dtype(dtype).itemsize

    nb = _pick_nb(N, C, H, W, mip, itemsize)
    R = nb * C
    grid = (N // nb,)

    # Block-diagonal weights: one MXU matmul per conv per grid step, regardless
    # of how many samples share the block.  Bias columns tiled to match.
    eye = jnp.eye(nb, dtype=jnp.float32)
    w1b = jnp.kron(eye, params["w1_folded"])            # (nb*mip, nb*C)
    s1b = jnp.tile(params["shift1_folded"], (nb, 1))    # (nb*mip, 1)
    whb = jnp.kron(eye, params["w_h"])                  # (nb*C, nb*mip)
    bhb = jnp.tile(params["b_h"], (nb, 1))              # (nb*C, 1)
    wwb = jnp.kron(eye, params["w_w"])                  # (nb*C, nb*mip)
    bwb = jnp.tile(params["b_w"], (nb, 1))              # (nb*C, 1)

    # Tiny index vectors used to build the expansion masks in-kernel.
    hw = jnp.arange(HW, dtype=jnp.int32)
    row_idx = (hw // W).reshape(1, HW)
    col_idx = (hw % W).reshape(1, HW)

    x_flat = x.reshape(N * C, HW)                       # lane-dense rows

    def const(shape):
        return pl.BlockSpec(shape, lambda n: (0, 0))

    in_specs = [
        pl.BlockSpec((R, HW), lambda n: (n, 0)),        # x block (nb samples)
        const((nb * mip, nb * C)),                      # block-diag conv1 (+BN)
        const((nb * mip, 1)),                           # folded conv1+BN shift
        const((nb * C, nb * mip)),                      # block-diag w_h
        const((nb * C, 1)),                             # b_h
        const((nb * C, nb * mip)),                      # block-diag w_w
        const((nb * C, 1)),                             # b_w
        const((1, HW)),                                 # row index (hw // W)
        const((1, HW)),                                 # col index (hw % W)
    ]
    out_spec = pl.BlockSpec((R, HW), lambda n: (n, 0))

    vmem_limit = int(min(60 << 20,
                         max(32 << 20,
                             _footprint_bytes(nb, C, H, W, mip, itemsize) + (4 << 20))))

    # Advisory cost: memory-bound (2 passes over x), tiny matmul/exp work.
    weight_bytes = 4 * (3 * mip * C + mip + 2 * C)
    cost = pl.CostEstimate(
        flops=(4 * N * C * HW * (H + W)                 # pool + expand matmuls
               + 6 * N * mip * C * (H + W)              # conv1 + conv_h/w
               + 2 * N * C * HW),                       # final elementwise
        transcendentals=N * C * (H + W),                # sigmoids
        bytes_accessed=2 * N * C * HW * itemsize + weight_bytes)

    kernel = functools.partial(coordatt_kernel, H, W)

    out_flat = pl.pallas_call(
        kernel,
        out_shape=jax.ShapeDtypeStruct((N * C, HW), dtype),
        grid_spec=pltpu.PrefetchScalarGridSpec(
            num_scalar_prefetch=0,
            grid=grid,
            in_specs=in_specs,
            out_specs=out_spec,
        ),
        compiler_params=pltpu.CompilerParams(
            dimension_semantics=("parallel",),
            vmem_limit_bytes=vmem_limit),
        cost_estimate=cost,
    )(x_flat, w1b, s1b, whb, bhb, wwb, bwb, row_idx, col_idx)
    return out_flat.reshape(N, C, H, W)


def init_params(key, in_channels, out_channels, reduction=32, eps=1e-5):
    mip = max(8, in_channels // reduction)
    ks = jax.random.split(key, 8)
    # 1x1 conv weights stored as (out, in) matrices (kernel dims squeezed).
    w1 = 0.1 * jax.random.normal(ks[0], (mip, in_channels), jnp.float32)
    b1 = 0.1 * jax.random.normal(ks[1], (mip, 1), jnp.float32)
    w_h = 0.1 * jax.random.normal(ks[2], (out_channels, mip), jnp.float32)
    b_h = 0.1 * jax.random.normal(ks[3], (out_channels, 1), jnp.float32)
    w_w = 0.1 * jax.random.normal(ks[4], (out_channels, mip), jnp.float32)
    b_w = 0.1 * jax.random.normal(ks[5], (out_channels, 1), jnp.float32)
    # BatchNorm2d (inference / running-stats form).
    gamma = 1.0 + 0.1 * jax.random.normal(ks[6], (mip, 1), jnp.float32)
    beta = 0.1 * jax.random.normal(ks[7], (mip, 1), jnp.float32)
    running_mean = jnp.zeros((mip, 1), jnp.float32)
    running_var = jnp.ones((mip, 1), jnp.float32)
    bn_scale = gamma / jnp.sqrt(running_var + eps)
    bn_shift = beta - running_mean * bn_scale
    # Fold conv1 bias + BN into a single weight/shift pair for the kernel.
    w1_folded = bn_scale * w1                       # (mip, C)
    shift1_folded = bn_scale * b1 + bn_shift        # (mip, 1)
    return dict(w1=w1, b1=b1, bn_scale=bn_scale, bn_shift=bn_shift,
                w1_folded=w1_folded, shift1_folded=shift1_folded,
                w_h=w_h, b_h=b_h, w_w=w_w, b_w=b_w)


def coord_att_ref(x, p):
    """Pure-JAX reference mirroring the PyTorch forward (eval-mode BN, ReLU)."""
    N, C, H, W = x.shape
    x_h = jnp.mean(x, axis=3)                      # (N, C, H)
    x_w = jnp.mean(x, axis=2)                      # (N, C, W)
    y = jnp.concatenate([x_h, x_w], axis=2)        # (N, C, H+W)
    y = jnp.einsum("mc,nct->nmt", p["w1"], y) + p["b1"][None]
    y = y * p["bn_scale"][None] + p["bn_shift"][None]
    y = jnp.maximum(y, 0.0)
    yh, yw = y[:, :, :H], y[:, :, H:]
    a_h = jax.nn.sigmoid(jnp.einsum("om,nmh->noh", p["w_h"], yh) + p["b_h"][None])
    a_w = jax.nn.sigmoid(jnp.einsum("om,nmw->now", p["w_w"], yw) + p["b_w"][None])
    return x * a_h[:, :, :, None] * a_w[:, :, None, :]


if __name__ == "__main__":
    key = jax.random.PRNGKey(0)
    k_x, k_p = jax.random.split(key)

    N, C, H, W = 2, 4, 16, 16          # in_channels == out_channels == 4
    x = jax.random.normal(k_x, (N, C, H, W), jnp.float32)
    params = init_params(k_p, in_channels=C, out_channels=C, reduction=32)

    out = jax.block_until_ready(coord_att(x, params))

    ref = coord_att_ref(x, params)
    # Tolerance covers MXU multi-pass f32 rounding in the pooling/expansion
    # matmuls vs. the exact mean/broadcast in the reference.
    np.testing.assert_allclose(np.asarray(out), np.asarray(ref), rtol=1e-4, atol=1e-4)

    print("KERNEL_OK")
</pallas_src>

<mosaic_0001>
module attributes {stable_mosaic.version = 11 : i64} {
  func.func @coordatt_kernel(%arg0: i32, %arg1: memref<8x256xf32, #tpu.memory_space<vmem>>, %arg2: memref<16x8xf32, #tpu.memory_space<vmem>>, %arg3: memref<16x1xf32, #tpu.memory_space<vmem>>, %arg4: memref<8x16xf32, #tpu.memory_space<vmem>>, %arg5: memref<8x1xf32, #tpu.memory_space<vmem>>, %arg6: memref<8x16xf32, #tpu.memory_space<vmem>>, %arg7: memref<8x1xf32, #tpu.memory_space<vmem>>, %arg8: memref<1x256xi32, #tpu.memory_space<vmem>>, %arg9: memref<1x256xi32, #tpu.memory_space<vmem>>, %arg10: memref<8x256xf32, #tpu.memory_space<vmem>>) attributes {dimension_semantics = [#tpu.dimension_semantics<parallel>], iteration_bounds = array<i64: 1>, scalar_prefetch = 0 : i64, scratch_operands = 0 : i64, tpu.core_type = #tpu.core_type<tc>, window_params = [{transform_indices = @transform_0, window_bounds = array<i64: 8, 256>}, {pipeline_mode = #tpu.pipeline_mode<synchronous>, transform_indices = @transform_1, window_bounds = array<i64: 16, 8>}, {pipeline_mode = #tpu.pipeline_mode<synchronous>, transform_indices = @transform_2, window_bounds = array<i64: 16, 1>}, {pipeline_mode = #tpu.pipeline_mode<synchronous>, transform_indices = @transform_3, window_bounds = array<i64: 8, 16>}, {pipeline_mode = #tpu.pipeline_mode<synchronous>, transform_indices = @transform_4, window_bounds = array<i64: 8, 1>}, {pipeline_mode = #tpu.pipeline_mode<synchronous>, transform_indices = @transform_5, window_bounds = array<i64: 8, 16>}, {pipeline_mode = #tpu.pipeline_mode<synchronous>, transform_indices = @transform_6, window_bounds = array<i64: 8, 1>}, {pipeline_mode = #tpu.pipeline_mode<synchronous>, transform_indices = @transform_7, window_bounds = array<i64: 1, 256>}, {pipeline_mode = #tpu.pipeline_mode<synchronous>, transform_indices = @transform_8, window_bounds = array<i64: 1, 256>}, {transform_indices = @transform_9, window_bounds = array<i64: 8, 256>}]} {
    %0 = tpu.iota {dimensions = array<i32: 0>} : vector<16x256xi32>
    %1 = tpu.iota {dimensions = array<i32: 0>} : vector<16x256xi32>
    %c0 = arith.constant 0 : index
    %c0_0 = arith.constant 0 : index
    %2 = vector.load %arg8[%c0, %c0_0] : memref<1x256xi32, #tpu.memory_space<vmem>>, vector<1x256xi32>
    %3 = vector.broadcast %2 : vector<1x256xi32> to vector<16x256xi32>
    %4 = arith.cmpi eq, %3, %0 : vector<16x256xi32>
    %5 = arith.extui %4 : vector<16x256xi1> to vector<16x256xi32>
    %6 = arith.sitofp %5 : vector<16x256xi32> to vector<16x256xf32>
    %c0_1 = arith.constant 0 : index
    %c0_2 = arith.constant 0 : index
    %7 = vector.load %arg9[%c0_1, %c0_2] : memref<1x256xi32, #tpu.memory_space<vmem>>, vector<1x256xi32>
    %8 = vector.broadcast %7 : vector<1x256xi32> to vector<16x256xi32>
    %9 = arith.cmpi eq, %8, %1 : vector<16x256xi32>
    %10 = arith.extui %9 : vector<16x256xi1> to vector<16x256xi32>
    %11 = arith.sitofp %10 : vector<16x256xi32> to vector<16x256xf32>
    %c0_3 = arith.constant 0 : index
    %c0_4 = arith.constant 0 : index
    %12 = vector.load %arg1[%c0_3, %c0_4] : memref<8x256xf32, #tpu.memory_space<vmem>>, vector<8x256xf32>
    %cst = arith.constant dense<0.000000e+00> : vector<8x16xf32>
    %13 = tpu.matmul %12, %6, %cst {dimension_numbers = #tpu.dot_dimension_numbers<[1], [1], [0], [0], [0, 0, 1, 0], [], []>} : vector<8x256xf32>, vector<16x256xf32>, vector<8x16xf32> -> vector<8x16xf32>
    %cst_5 = arith.constant 6.250000e-02 : f32
    %14 = vector.broadcast %cst_5 : f32 to vector<8x16xf32>
    %15 = arith.mulf %13, %14 : vector<8x16xf32>
    %cst_6 = arith.constant dense<0.000000e+00> : vector<8x16xf32>
    %16 = tpu.matmul %12, %11, %cst_6 {dimension_numbers = #tpu.dot_dimension_numbers<[1], [1], [0], [0], [0, 0, 1, 0], [], []>} : vector<8x256xf32>, vector<16x256xf32>, vector<8x16xf32> -> vector<8x16xf32>
    %cst_7 = arith.constant 6.250000e-02 : f32
    %17 = vector.broadcast %cst_7 : f32 to vector<8x16xf32>
    %18 = arith.mulf %16, %17 : vector<8x16xf32>
    %c0_8 = arith.constant 0 : index
    %c0_9 = arith.constant 0 : index
    %19 = vector.load %arg2[%c0_8, %c0_9] : memref<16x8xf32, #tpu.memory_space<vmem>>, vector<16x8xf32>
    %cst_10 = arith.constant dense<0.000000e+00> : vector<16x16xf32>
    %20 = tpu.matmul %19, %15, %cst_10 {dimension_numbers = #tpu.dot_dimension_numbers<[1], [0], [0], [1], [0, 0, 1, 1], [], []>} : vector<16x8xf32>, vector<8x16xf32>, vector<16x16xf32> -> vector<16x16xf32>
    %c0_11 = arith.constant 0 : index
    %c0_12 = arith.constant 0 : index
    %21 = vector.load %arg3[%c0_11, %c0_12] : memref<16x1xf32, #tpu.memory_space<vmem>>, vector<16x1xf32>
    %22 = vector.broadcast %21 : vector<16x1xf32> to vector<16x16xf32>
    %23 = arith.addf %20, %22 : vector<16x16xf32>
    %cst_13 = arith.constant 0.000000e+00 : f32
    %24 = vector.broadcast %cst_13 : f32 to vector<16x16xf32>
    %25 = arith.maximumf %23, %24 : vector<16x16xf32>
    %c0_14 = arith.constant 0 : index
    %c0_15 = arith.constant 0 : index
    %26 = vector.load %arg2[%c0_14, %c0_15] : memref<16x8xf32, #tpu.memory_space<vmem>>, vector<16x8xf32>
    %cst_16 = arith.constant dense<0.000000e+00> : vector<16x16xf32>
    %27 = tpu.matmul %26, %18, %cst_16 {dimension_numbers = #tpu.dot_dimension_numbers<[1], [0], [0], [1], [0, 0, 1, 1], [], []>} : vector<16x8xf32>, vector<8x16xf32>, vector<16x16xf32> -> vector<16x16xf32>
    %c0_17 = arith.constant 0 : index
    %c0_18 = arith.constant 0 : index
    %28 = vector.load %arg3[%c0_17, %c0_18] : memref<16x1xf32, #tpu.memory_space<vmem>>, vector<16x1xf32>
    %29 = vector.broadcast %28 : vector<16x1xf32> to vector<16x16xf32>
    %30 = arith.addf %27, %29 : vector<16x16xf32>
    %cst_19 = arith.constant 0.000000e+00 : f32
    %31 = vector.broadcast %cst_19 : f32 to vector<16x16xf32>
    %32 = arith.maximumf %30, %31 : vector<16x16xf32>
    %c0_20 = arith.constant 0 : index
    %c0_21 = arith.constant 0 : index
    %33 = vector.load %arg4[%c0_20, %c0_21] : memref<8x16xf32, #tpu.memory_space<vmem>>, vector<8x16xf32>
    %cst_22 = arith.constant dense<0.000000e+00> : vector<8x16xf32>
    %34 = tpu.matmul %33, %25, %cst_22 {dimension_numbers = #tpu.dot_dimension_numbers<[1], [0], [0], [1], [0, 0, 1, 1], [], []>} : vector<8x16xf32>, vector<16x16xf32>, vector<8x16xf32> -> vector<8x16xf32>
    %c0_23 = arith.constant 0 : index
    %c0_24 = arith.constant 0 : index
    %35 = vector.load %arg5[%c0_23, %c0_24] : memref<8x1xf32, #tpu.memory_space<vmem>>, vector<8x1xf32>
    %36 = vector.broadcast %35 : vector<8x1xf32> to vector<8x16xf32>
    %37 = arith.addf %34, %36 : vector<8x16xf32>
    %38 = arith.negf %37 : vector<8x16xf32>
    %39 = math.exp %38 : vector<8x16xf32>
    %cst_25 = arith.constant 1.000000e+00 : f32
    %40 = vector.broadcast %cst_25 : f32 to vector<8x16xf32>
    %41 = arith.addf %40, %39 : vector<8x16xf32>
    %42 = arith.divf %40, %41 : vector<8x16xf32>
    %c0_26 = arith.constant 0 : index
    %c0_27 = arith.constant 0 : index
    %43 = vector.load %arg6[%c0_26, %c0_27] : memref<8x16xf32, #tpu.memory_space<vmem>>, vector<8x16xf32>
    %cst_28 = arith.constant dense<0.000000e+00> : vector<8x16xf32>
    %44 = tpu.matmul %43, %32, %cst_28 {dimension_numbers = #tpu.dot_dimension_numbers<[1], [0], [0], [1], [0, 0, 1, 1], [], []>} : vector<8x16xf32>, vector<16x16xf32>, vector<8x16xf32> -> vector<8x16xf32>
    %c0_29 = arith.constant 0 : index
    %c0_30 = arith.constant 0 : index
    %45 = vector.load %arg7[%c0_29, %c0_30] : memref<8x1xf32, #tpu.memory_space<vmem>>, vector<8x1xf32>
    %46 = vector.broadcast %45 : vector<8x1xf32> to vector<8x16xf32>
    %47 = arith.addf %44, %46 : vector<8x16xf32>
    %48 = arith.negf %47 : vector<8x16xf32>
    %49 = math.exp %48 : vector<8x16xf32>
    %cst_31 = arith.constant 1.000000e+00 : f32
    %50 = vector.broadcast %cst_31 : f32 to vector<8x16xf32>
    %51 = arith.addf %50, %49 : vector<8x16xf32>
    %52 = arith.divf %50, %51 : vector<8x16xf32>
    %cst_32 = arith.constant dense<0.000000e+00> : vector<8x256xf32>
    %53 = tpu.matmul %42, %6, %cst_32 {dimension_numbers = #tpu.dot_dimension_numbers<[1], [0], [0], [1], [0, 0, 1, 1], [], []>} : vector<8x16xf32>, vector<16x256xf32>, vector<8x256xf32> -> vector<8x256xf32>
    %54 = arith.mulf %12, %53 : vector<8x256xf32>
    %c0_33 = arith.constant 0 : index
    %c0_34 = arith.constant 0 : index
    %55 = vector.load %arg10[%c0_33, %c0_34] : memref<8x256xf32, #tpu.memory_space<vmem>>, vector<8x256xf32>
    tpu.vector_store %arg10[%c0_33, %c0_34], %54 {strides = array<i32>} : memref<8x256xf32, #tpu.memory_space<vmem>>, vector<8x256xf32>,
    %cst_35 = arith.constant dense<0.000000e+00> : vector<8x256xf32>
    %56 = tpu.matmul %52, %11, %cst_35 {dimension_numbers = #tpu.dot_dimension_numbers<[1], [0], [0], [1], [0, 0, 1, 1], [], []>} : vector<8x16xf32>, vector<16x256xf32>, vector<8x256xf32> -> vector<8x256xf32>
    %c0_36 = arith.constant 0 : index
    %c0_37 = arith.constant 0 : index
    %57 = vector.load %arg10[%c0_36, %c0_37] : memref<8x256xf32, #tpu.memory_space<vmem>>, vector<8x256xf32>
    %58 = arith.mulf %57, %56 : vector<8x256xf32>
    %c0_38 = arith.constant 0 : index
    %c0_39 = arith.constant 0 : index
    %59 = vector.load %arg10[%c0_38, %c0_39] : memref<8x256xf32, #tpu.memory_space<vmem>>, vector<8x256xf32>
    tpu.vector_store %arg10[%c0_38, %c0_39], %58 {strides = array<i32>} : memref<8x256xf32, #tpu.memory_space<vmem>>, vector<8x256xf32>,
    return
  }
  func.func @transform_0(%arg0: i32) -> (i32, i32) {
    %c0_i32 = arith.constant 0 : i32
    %c0_i32_0 = arith.constant 0 : i32
    return %arg0, %c0_i32 : i32, i32
  }
  func.func @transform_1(%arg0: i32) -> (i32, i32) {
    %c0_i32 = arith.constant 0 : i32
    %c0_i32_0 = arith.constant 0 : i32
    %c0_i32_1 = arith.constant 0 : i32
    return %c0_i32, %c0_i32_0 : i32, i32
  }
  func.func @transform_2(%arg0: i32) -> (i32, i32) {
    %c0_i32 = arith.constant 0 : i32
    %c0_i32_0 = arith.constant 0 : i32
    %c0_i32_1 = arith.constant 0 : i32
    return %c0_i32, %c0_i32_0 : i32, i32
  }
  func.func @transform_3(%arg0: i32) -> (i32, i32) {
    %c0_i32 = arith.constant 0 : i32
    %c0_i32_0 = arith.constant 0 : i32
    %c0_i32_1 = arith.constant 0 : i32
    return %c0_i32, %c0_i32_0 : i32, i32
  }
  func.func @transform_4(%arg0: i32) -> (i32, i32) {
    %c0_i32 = arith.constant 0 : i32
    %c0_i32_0 = arith.constant 0 : i32
    %c0_i32_1 = arith.constant 0 : i32
    return %c0_i32, %c0_i32_0 : i32, i32
  }
  func.func @transform_5(%arg0: i32) -> (i32, i32) {
    %c0_i32 = arith.constant 0 : i32
    %c0_i32_0 = arith.constant 0 : i32
    %c0_i32_1 = arith.constant 0 : i32
    return %c0_i32, %c0_i32_0 : i32, i32
  }
  func.func @transform_6(%arg0: i32) -> (i32, i32) {
    %c0_i32 = arith.constant 0 : i32
    %c0_i32_0 = arith.constant 0 : i32
    %c0_i32_1 = arith.constant 0 : i32
    return %c0_i32, %c0_i32_0 : i32, i32
  }
  func.func @transform_7(%arg0: i32) -> (i32, i32) {
    %c0_i32 = arith.constant 0 : i32
    %c0_i32_0 = arith.constant 0 : i32
    %c0_i32_1 = arith.constant 0 : i32
    return %c0_i32, %c0_i32_0 : i32, i32
  }
  func.func @transform_8(%arg0: i32) -> (i32, i32) {
    %c0_i32 = arith.constant 0 : i32
    %c0_i32_0 = arith.constant 0 : i32
    %c0_i32_1 = arith.constant 0 : i32
    return %c0_i32, %c0_i32_0 : i32, i32
  }
  func.func @transform_9(%arg0: i32) -> (i32, i32) {
    %c0_i32 = arith.constant 0 : i32
    %c0_i32_0 = arith.constant 0 : i32
    return %arg0, %c0_i32 : i32, i32
  }
}

</mosaic_0001>

<bundles_post_ra>
// kernel: tpu_custom_call.1
= control target key start
LH: loop header
LB: loop body
LE: loop exit
PB: predicated region body
PF: predicated region fallthrough
CT: control target
= control target key end

     0   :  { %v33_v0 = vlaneseq  ;;  %s695_s0 = inlined_call_operand.vmem [shape: f32[8,256], index: 0, kind: input, shape index: {}]   ;;  %s696_s1 = inlined_call_operand.vmem [shape: f32[16,8], index: 1, kind: input, shape index: {}]   ;;  %s697_s2 = inlined_call_operand.vmem [shape: f32[16,1], index: 2, kind: input, shape index: {}]   ;;  %s698_s3 = inlined_call_operand.vmem [shape: f32[8,16], index: 3, kind: input, shape index: {}]   ;;  %s699_s4 = inlined_call_operand.vmem [shape: f32[8,1], index: 4, kind: input, shape index: {}]   ;;  %s700_s5 = inlined_call_operand.vmem [shape: f32[8,16], index: 5, kind: input, shape index: {}]   ;;  %s701_s6 = inlined_call_operand.vmem [shape: f32[8,1], index: 6, kind: input, shape index: {}]   ;;  %s702_s7 = inlined_call_operand.vmem [shape: s32[1,256], index: 7, kind: input, shape index: {}]   ;;  %s703_s8 = inlined_call_operand.vmem [shape: s32[1,256], index: 8, kind: input, shape index: {}]   ;;  %s704_s9 = inlined_call_operand.hbm [shape: f32[8,256], index: 9, kind: output, shape index: {}]  }
   0x1   :  { %v36_v1 = vld [vmem:[%s702_s7] sm:$0x3] }
   0x2   :  { %v51_v2 = vld [vmem:[%s703_s8] sm:$0x3]  ;;  %v37_v3 = vperm.slane %v36_v1, 0  ;;  %v34_v4 = vshrl.u32 %v33_v0, 7  ;;  %v38_v5 = vperm.slane %v36_v1, 1 }
   0x3   :  { %v52_v6 = vperm.slane %v51_v2, 0  ;;  %v53_v7 = vperm.slane %v51_v2, 1 }
   0x4   :  { %14 = vsyncpa [#allocation3], 0  ;;  %v35_v8 = vadd.s32 8, %v34_v4  ;;  %v507_v13 = vmov 1.0   ;;  %vm594_vm4 = vcmp.eq.s32.totalorder %v37_v3, %v34_v4  ;;  %vm598_vm5 = vcmp.eq.s32.totalorder %v38_v5, %v34_v4  ;;  %v619_v18 = vld [vmem:[%s695_s0] sm:$0xff]  ;;  %v624_v19 = vld [vmem:[%s695_s0 + $0x8] sm:$0xff] }
   0x5   :  { %vm602_vm6 = vcmp.eq.s32.totalorder %v52_v6, %v34_v4  ;;  %vm606_vm7 = vcmp.eq.s32.totalorder %v53_v7, %v34_v4  ;;  %v508_v20 = vmov 0   ;;  %v153_v21 = vld [vmem:[%s697_s2 + $0x8] sm:$0xff]  ;;  %v152_v22 = vld [vmem:[%s697_s2] sm:$0xff]  ;;  %vm164_vm8 = vcmask 64512   ;;  %s423_s28 = sshll.u32 %s704_s9, 4  ;;  %s424_s28 = int_to_ptr.hbm [resolvable:$true] %s423_s28 }
   0x6   :  { %vm566_vm0 = vcmp.eq.s32.totalorder %v37_v3, %v35_v8  ;;  %vm570_vm1 = vcmp.eq.s32.totalorder %v38_v5, %v35_v8  ;;  %vm574_vm2 = vcmp.eq.s32.totalorder %v52_v6, %v35_v8  ;;  %vm578_vm3 = vcmp.eq.s32.totalorder %v53_v7, %v35_v8  ;;  %471 = vset.pattern.permute.xlu0 %v508_v20  ;;  %v150_v27 = vld [vmem:[%s696_s1] sm:$0xff]  ;;  %v151_v32 = vld [vmem:[%s696_s1 + $0x8] sm:$0xff] }
   0x7   :  { %440 = vmatpush.xpose.msk.msra.mxu0 %vm566_vm0, %v507_v13  ;;  %442 = vmatpush.xpose.msk.msra.mxu1 %vm570_vm1, %v507_v13  ;;  %v222_v33 = vld [vmem:[%s699_s4] sm:$0xff]  ;;  %vm228_vm9 = vcmask 130048  }
   0x8   :  { %444 = vmatpush.xpose.msk.msra.mxu2 %vm574_vm2, %v507_v13  ;;  %446 = vmatpush.xpose.msk.msra.mxu3 %vm578_vm3, %v507_v13  ;;  %v272_v35 = vld [vmem:[%s701_s6] sm:$0xff] }
   0x9   :  { %472 = vset.pattern.permute.xlu1 %v508_v20  ;;  %161 = vperm.xlu0 %471, %v153_v21   ;;  %v221_v44 = vld [vmem:[%s698_s3] sm:$0xff] }
   0xa   :  { %225 = vperm.xlu1 %472, %v222_v33   ;;  %v271_v50 = vld [vmem:[%s700_s5] sm:$0xff]  ;;  %s509_s5 = smov [#allocation2]  }
   0xb   :  { %441 = vmatpush.xpose.msk.msra.mxu0 %vm594_vm4, %v507_v13  ;;  %443 = vmatpush.xpose.msk.msra.mxu1 %vm598_vm5, %v507_v13  ;;  %s421_s6 = sshll.u32 %s509_s5, 4  ;;  %s422_s6 = int_to_ptr.vmem [resolvable:$true] %s421_s6 }
   0xc   :  { %445 = vmatpush.xpose.msk.msra.mxu2 %vm602_vm6, %v507_v13  ;;  %447 = vmatpush.xpose.msk.msra.mxu3 %vm606_vm7, %v507_v13 }
   0xe   :  { %84 = vmatmul.f32.vlgmr.msra.gmra.mxu0 %v619_v18  ;;  %104 = vmatmul.f32.vlgmr.msra.gmra.mxu1 %v624_v19 }
   0xf   :  { %125 = vmatmul.f32.vlgmr.msra.gmra.mxu2 %v619_v18  ;;  %145 = vmatmul.f32.vlgmr.msra.gmra.mxu3 %v624_v19 }
  0x11   :  { %156 = vperm.xlu0 %471, %v152_v22  }
  0x12   :  { %275 = vperm.xlu1 %472, %v272_v35  }
  0x7b   :  { %v162_v34 = vpop.permute.xlu0 %161 }
  0x7c   :  { %v226_v51 = vpop.permute.xlu1 %225 }
  0x83   :  { %v157_v37 = vpop.permute.xlu0 %156 }
  0x84   :  { %v276_v55 = vpop.permute.xlu1 %275 }
  0x8b   :  { %v85_v23 = vpop.f32.mrf.mxu0  ;;  %v105_v24 = vpop.f32.mrf.mxu1 }
  0x8c   :  { %v106_v25 = vadd.f32 %v105_v24, %v85_v23 }
  0x8e   :  { %v108_v26 = vmul.f32 0.0625, %v106_v25 }
  0x90   :  { %186 = vmatpush.msrb.mxu0 %v108_v26 }
  0x91   :  { %448 = vmatmul.msk.f32.vlgmr.msrb.gmra.mxu0 %vm164_vm8, %v150_v27 }
  0x92   :  { %v126_v28 = vpop.f32.mrf.mxu2  ;;  %v146_v29 = vpop.f32.mrf.mxu3  ;;  %462 = vmatpush.msk.msra.mxu0 %vm574_vm2, %v507_v13 }
  0x93   :  { %v147_v30 = vadd.f32 %v146_v29, %v126_v28 }
  0x94   :  { %463 = vmatpush.msk.msra.mxu0 %vm602_vm6, %v507_v13 }
  0x95   :  { %v149_v31 = vmul.f32 0.0625, %v147_v30 }
  0x97   :  { %211 = vmatpush.msrb.mxu1 %v149_v31 }
  0x98   :  { %450 = vmatmul.msk.f32.vlgmr.msrb.gmra.mxu1 %vm164_vm8, %v150_v27 }
  0x99   :  { %449 = vmatmul.msk.f32.gmra.mxu0 %vm164_vm8, %v151_v32  ;;  %465 = vmatpush.msk.msra.mxu1 %vm578_vm3, %v507_v13 }
  0x9b   :  { %466 = vmatpush.msk.msra.mxu1 %vm606_vm7, %v507_v13 }
  0xa0   :  { %451 = vmatmul.msk.f32.gmra.mxu1 %vm164_vm8, %v151_v32 }
 0x10e   :  { %v188_v36 = vpop.f32.mrf.mxu0 }
 0x10f   :  { %v189_v40 = vadd.f32 %v188_v36, %v157_v37 }
 0x111   :  { %v194_v43 = vmax.f32 %v189_v40, 0.0 }
 0x115   :  { %v213_v38 = vpop.f32.mrf.mxu1 }
 0x116   :  { %v191_v39 = vpop.f32.mrf.mxu0  ;;  %v214_v46 = vadd.f32 %v213_v38, %v157_v37 }
 0x117   :  { %v192_v41 = vadd.f32 %v191_v39, %v162_v34 }
 0x118   :  { %v219_v49 = vmax.f32 %v214_v46, 0.0 }
 0x119   :  { %v195_v42 = vmax.f32 %v192_v41, 0.0 }
 0x11b   :  { %246 = vmatpush.msrb.mxu2 %v195_v42 }
 0x11d   :  { %v216_v45 = vpop.f32.mrf.mxu1  ;;  %247 = vmatpush.msrb.mxu2 %v194_v43 }
 0x11e   :  { %v217_v47 = vadd.f32 %v216_v45, %v162_v34  ;;  %452 = vmatmul.msk.f32.vlgmr.msrb.gmra.mxu2 %vm228_vm9, %v221_v44 }
 0x11f   :  { %456 = vmatpush.msk.msra.mxu2 %vm566_vm0, %v507_v13 }
 0x120   :  { %v220_v48 = vmax.f32 %v217_v47, 0.0 }
 0x121   :  { %457 = vmatpush.msk.msra.mxu2 %vm594_vm4, %v507_v13 }
 0x122   :  { %295 = vmatpush.msrb.mxu3 %v220_v48 }
 0x124   :  { %296 = vmatpush.msrb.mxu3 %v219_v49 }
 0x125   :  { %454 = vmatmul.msk.f32.vlgmr.msrb.gmra.mxu3 %vm228_vm9, %v271_v50 }
 0x126   :  { %459 = vmatpush.msk.msra.mxu3 %vm570_vm1, %v507_v13 }
 0x128   :  { %460 = vmatpush.msk.msra.mxu3 %vm598_vm5, %v507_v13 }
 0x1a1   :  { %v249_v52 = vpop.f32.mrf.mxu2 }
 0x1a2   :  { %v250_v53 = vadd.f32 %v249_v52, %v226_v51 }
 0x1a4   :  { %v453_v54 = vmul.f32 -1.442695, %v250_v53 }
 0x1a6   :  { %473 = vpow2.f32 %v453_v54 }
 0x1a8   :  { %v298_v56 = vpop.f32.mrf.mxu3 }
 0x1a9   :  { %v299_v57 = vadd.f32 %v298_v56, %v276_v55 }
 0x1ab   :  { %v455_v58 = vmul.f32 -1.442695, %v299_v57 }
 0x1ac   :  { %v474_v59 = vpop.eup %473 }
 0x1ad   :  { %v255_v60 = vadd.f32 1.0, %v474_v59  ;;  %475 = vpow2.f32 %v455_v58 }
 0x1af   :  { %477 = vrcp.f32 %v255_v60  ;;  %v267_v2 = vand.u32 2147483648, %v255_v60  ;;  %v265_v4 = vand.u32 2147483647, %v255_v60  ;;  %vm261_vm11 = vweird.f32 %v255_v60 }
 0x1b1   :  { %v268_v8 = vor.u32 1.1754944e-38, %v267_v2  ;;  %vm266_vm13 = vcmp.eq.f32.partialorder %v265_v4, 8.507059e+37 }
 0x1b3   :  { %v476_v61 = vpop.eup %475 }
 0x1b4   :  { %v304_v62 = vadd.f32 1.0, %v476_v61 }
 0x1b5   :  { %v478_v63 = vpop.eup %477 }
 0x1b6   :  { %v257_v0 = vmul.f32 %v478_v63, %v255_v60  ;;  %479 = vrcp.f32 %v304_v62  ;;  %vm262_vm10 = vweird.f32 %v478_v63  ;;  %v316_v12 = vand.u32 2147483648, %v304_v62 }
 0x1b7   :  { %vm263_vm12 = vmor %vm261_vm11, %vm262_vm10  ;;  %v314_v14 = vand.u32 2147483647, %v304_v62  ;;  %vm310_vm15 = vweird.f32 %v304_v62 }
 0x1b8   :  { %v258_v1 = vsub.f32 1.0, %v257_v0  ;;  %v317_v16 = vor.u32 1.1754944e-38, %v316_v12 }
 0x1b9   :  { %vm315_vm1 = vcmp.eq.f32.partialorder %v314_v14, 8.507059e+37 }
 0x1ba   :  { %v259_v3 = vmul.f32 %v478_v63, %v258_v1 }
 0x1bc   :  { %v480_v5 = vpop.eup %479  ;;  %v260_v6 = vadd.f32 %v478_v63, %v259_v3 }
 0x1bd   :  { %v306_v7 = vmul.f32 %v480_v5, %v304_v62  ;;  %vm311_vm14 = vweird.f32 %v480_v5 }
 0x1be   :  { %v264_v9 = vsel %vm263_vm12, %v478_v63, %v260_v6  ;;  %vm312_vm0 = vmor %vm310_vm15, %vm311_vm14 }
 0x1bf   :  { %v307_v10 = vsub.f32 1.0, %v306_v7  ;;  %v269_v11 = vsel %vm266_vm13, %v268_v8, %v264_v9 }
 0x1c0   :  { %458 = vmatmul.msk.f32.vlgmr.msra.gmra.mxu2 %vm228_vm9, %v269_v11  ;;  %461 = vmatmul.msk.f32.vlgmr.msra.gmra.mxu3 %vm228_vm9, %v269_v11 }
 0x1c1   :  { %v308_v13 = vmul.f32 %v480_v5, %v307_v10 }
 0x1c3   :  { %v309_v15 = vadd.f32 %v480_v5, %v308_v13 }
 0x1c5   :  { %v313_v17 = vsel %vm312_vm0, %v480_v5, %v309_v15 }
 0x1c6   :  { %v318_v20 = vsel %vm315_vm1, %v317_v16, %v313_v17 }
 0x1c7   :  { %464 = vmatmul.msk.f32.vlgmr.msra.gmra.mxu0 %vm228_vm9, %v318_v20  ;;  %467 = vmatmul.msk.f32.vlgmr.msra.gmra.mxu1 %vm228_vm9, %v318_v20 }
 0x243   :  { %v340_v21 = vpop.f32.mrf.mxu2  ;;  %v360_v22 = vpop.f32.mrf.mxu3 }
 0x244   :  { %v363_v23 = vmul.f32 %v340_v21, %v619_v18  ;;  %v364_v24 = vmul.f32 %v360_v22, %v624_v19  ;;  %v387_v25 = vpop.f32.mrf.mxu0  ;;  %v407_v26 = vpop.f32.mrf.mxu1 }
 0x246   :  { %v412_v27 = vmul.f32 %v387_v25, %v363_v23  ;;  %v413_v28 = vmul.f32 %v407_v26, %v364_v24 }
 0x248   :  { %414 = vst [vmem:[#allocation2] sm:$0xff] %v412_v27 }
 0x249   :  { %415 = vst [vmem:[#allocation2 + $0x8] sm:$0xff] %v413_v28 }
 0x24a   :  { %426 = dma.vmem_to_hbm [thread:$0]  %s422_s6, 256, %s424_s28, [#allocation3]  }
 0x24b   :  { %505 = dma.done.wait [#allocation3], 256  }
 0x24c   :  { %506 = vsyncadd [#allocation3], 4294967040 }
 0x24d   :  { %431 = vsyncpa [#allocation3], 1 }

</bundles_post_ra>
